<compile_context>
chip_gen: v5e
topology: v5e:2x2
jax: 0.10.0
libtpu: 0.0.40
codegen_flags: <defaults>
</compile_context>

<pallas_src>
import functools

import jax
import jax.numpy as jnp
import numpy as np
from jax import lax
from jax.experimental import pallas as pl
from jax.experimental.pallas import tpu as pltpu


def fusion_kernel(x_ref, p_ref, o_ref, *, resolutions, B, L, F, H, D):
    """Whole forward pass in one invocation (the model is latency-bound).

    x_ref : (B*L, F)  input rows, batch stacked along the sublane axis.
    p_ref : (F+H+2, max(H, D)) packed params: rows [0:F]=w1, [F]=b1,
            [F+1:F+1+H]=w2 (cols 0:D), [F+1+H]=b2 (cols 0:D).
    """
    BL = B * L
    R = len(resolutions)

    x = x_ref[...]                                   # (BL, F)
    # Static ref slices of the packed parameter slab (zero-cost views).
    w1 = p_ref[0:F, 0:H]                             # (F, H)
    b1 = p_ref[F:F + 1, 0:H]                         # (1, H)
    w2 = p_ref[F + 1:F + 1 + H, 0:D]                 # (H, D)
    b2 = p_ref[F + 1 + H:F + 2 + H, 0:D]             # (1, D)

    # x @ w1 with K = F = 2: do it as F broadcast FMAs on the VPU instead of a
    # massively underfilled MXU matmul.  Exact f32.
    u = x[:, 0:1] * w1[0:1, :]                       # (BL, H)
    for f in range(1, F):
        u = u + x[:, f:f + 1] * w1[f:f + 1, :]

    # Row index for the in-kernel group-start masks (replaces the old
    # host-built wrow input and its DMA).
    row = lax.broadcasted_iota(jnp.int32, (BL, 1), 0)

    acc = jnp.zeros((1, H), jnp.float32)
    # Resolutions are static -> unroll in Python.  Group sums via pltpu.roll
    # keep every intermediate at a uniform (BL, H) layout; rolls go to the
    # XLU slot so they don't compete with the VPU adds.
    for r in resolutions:
        Lr = L // r
        v = u
        for j in range(1, r):
            # roll by -j (mod BL): v[i] = sum_{j < r} u[i + j].  Wrapped rows
            # are never group starts (BL % r == 0) so the mask zeroes them.
            v = v + pltpu.roll(u, shift=BL - j, axis=0)
        h = jnp.maximum(v + b1, 0.0)                                  # (BL, H)
        # Folds the group-start mask, the 1/Lr length-mean, the 1/B batch-mean
        # and the 1/R resolution-mean into one per-row weight.
        w = jnp.where(row % r == 0, 1.0 / (Lr * B * R), 0.0)          # (BL, 1)
        acc = acc + (h * w).sum(axis=0, keepdims=True)                # (1, H)

    # acc is already the fully averaged pooled feature; finish with the base
    # model's output projection (the single MXU call) and bias, applied once.
    o_ref[...] = jnp.dot(acc, w2, preferred_element_type=jnp.float32) + b2


def multi_scale_fusion(x, resolutions, w1, b1, w2, b2):
    B, L, F = x.shape
    H = w1.shape[1]
    D = w2.shape[1]
    BL = B * L

    # Load-bearing: groups must not straddle the batch boundary in the stacked
    # (B*L, F) layout, and the in-kernel roll/mask group-sum relies on it.
    for r in resolutions:
        assert L % r == 0, "sequence length must be divisible by every resolution"

    # Pack all small parameters into ONE slab -> one DMA instead of four.
    W = max(H, D)
    params = jnp.zeros((F + H + 2, W), jnp.float32)
    params = params.at[0:F, 0:H].set(w1.astype(jnp.float32))
    params = params.at[F:F + 1, 0:H].set(b1.astype(jnp.float32))
    params = params.at[F + 1:F + 1 + H, 0:D].set(w2.astype(jnp.float32))
    params = params.at[F + 1 + H:F + 2 + H, 0:D].set(b2.astype(jnp.float32))

    # Layout plumbing only: stack the batch along the sublane axis so the
    # kernel sees a single lane-friendly 2-D slab.
    x2 = x.reshape(BL, F).astype(jnp.float32)

    kernel = functools.partial(
        fusion_kernel, resolutions=tuple(resolutions), B=B, L=L, F=F, H=H, D=D)
    vmem = pl.BlockSpec(memory_space=pltpu.MemorySpace.VMEM)  # whole array in VMEM
    return pl.pallas_call(
        kernel,
        out_shape=jax.ShapeDtypeStruct((1, D), jnp.float32),
        in_specs=[vmem, vmem],
        out_specs=vmem,
    )(x2, params)


# ----------------------------- pure-JAX reference -----------------------------
def _base_model_ref(chunk, w1, b1, w2, b2):
    # chunk: (1, L', F)
    h = jax.nn.relu(
        jnp.matmul(chunk, w1, precision=lax.Precision.HIGHEST) + b1)     # (1, L', H)
    pooled = jnp.mean(h, axis=1)                                         # (1, H)
    return jnp.matmul(pooled, w2, precision=lax.Precision.HIGHEST) + b2  # (1, D)


def ref_forward(x, resolutions, w1, b1, w2, b2):
    B, L, F = x.shape
    processed = []
    for r in resolutions:
        if r == 1:
            chunks = x[:, None]                                          # (B, 1, L, F)
        else:
            chunks = x.reshape(B, L // r, r, F).sum(axis=2)[:, None]     # (B, 1, L//r, F)
        scale = [_base_model_ref(chunks[b], w1, b1, w2, b2) for b in range(B)]
        stacked = jnp.stack(scale, axis=1)                               # (1, B, D)
        processed.append(jnp.mean(stacked, axis=1))                      # (1, D)
    return jnp.mean(jnp.stack(processed, axis=1), axis=1)                # (1, D)


if __name__ == "__main__":
    B, L, F = 2, 8, 2          # x: (batch, seq_len, 2) -- matches x.view(B, L//r, r, 2)
    H, D = 32, 16              # synthetic base_model hidden / output dims
    resolutions = [1, 2, 4]

    key = jax.random.PRNGKey(0)
    kx, k1, k2, k3, k4 = jax.random.split(key, 5)
    x = jax.random.normal(kx, (B, L, F), jnp.float32)
    w1 = 0.3 * jax.random.normal(k1, (F, H), jnp.float32)
    b1 = 0.1 * jax.random.normal(k2, (1, H), jnp.float32)
    w2 = 0.3 * jax.random.normal(k3, (H, D), jnp.float32)
    b2 = 0.1 * jax.random.normal(k4, (1, D), jnp.float32)

    out = jax.block_until_ready(multi_scale_fusion(x, resolutions, w1, b1, w2, b2))

    ref = jax.block_until_ready(ref_forward(x, resolutions, w1, b1, w2, b2))
    np.testing.assert_allclose(np.asarray(out), np.asarray(ref), rtol=1e-4, atol=1e-4)

    print("KERNEL_OK")
</pallas_src>

<mosaic_0001>
module attributes {stable_mosaic.version = 11 : i64} {
  func.func @fusion_kernel(%arg0: memref<16x2xf32, #tpu.memory_space<vmem>>, %arg1: memref<36x32xf32, #tpu.memory_space<vmem>>, %arg2: memref<1x16xf32, #tpu.memory_space<vmem>>) attributes {dimension_semantics = [], scalar_prefetch = 0 : i64, scratch_operands = 0 : i64, tpu.core_type = #tpu.core_type<tc>} {
    %c0 = arith.constant 0 : index
    %c0_0 = arith.constant 0 : index
    %0 = vector.load %arg0[%c0, %c0_0] : memref<16x2xf32, #tpu.memory_space<vmem>>, vector<16x2xf32>
    %c0_1 = arith.constant 0 : index
    %c0_2 = arith.constant 0 : index
    %1 = vector.load %arg1[%c0_1, %c0_2] : memref<36x32xf32, #tpu.memory_space<vmem>>, vector<2x32xf32>
    %c2 = arith.constant 2 : index
    %c0_3 = arith.constant 0 : index
    %2 = vector.load %arg1[%c2, %c0_3] : memref<36x32xf32, #tpu.memory_space<vmem>>, vector<1x32xf32>
    %c3 = arith.constant 3 : index
    %c0_4 = arith.constant 0 : index
    %3 = vector.load %arg1[%c3, %c0_4] : memref<36x32xf32, #tpu.memory_space<vmem>>, vector<32x16xf32>
    %c35 = arith.constant 35 : index
    %c0_5 = arith.constant 0 : index
    %4 = vector.load %arg1[%c35, %c0_5] : memref<36x32xf32, #tpu.memory_space<vmem>>, vector<1x16xf32>
    %5 = vector.extract_strided_slice %0 {offsets = [0, 0], sizes = [16, 1], strides = [1, 1]} : vector<16x2xf32> to vector<16x1xf32>
    %6 = vector.extract_strided_slice %1 {offsets = [0, 0], sizes = [1, 32], strides = [1, 1]} : vector<2x32xf32> to vector<1x32xf32>
    %7 = vector.broadcast %5 : vector<16x1xf32> to vector<16x32xf32>
    %8 = vector.broadcast %6 : vector<1x32xf32> to vector<16x32xf32>
    %9 = arith.mulf %7, %8 : vector<16x32xf32>
    %10 = vector.extract_strided_slice %0 {offsets = [0, 1], sizes = [16, 1], strides = [1, 1]} : vector<16x2xf32> to vector<16x1xf32>
    %11 = vector.extract_strided_slice %1 {offsets = [1, 0], sizes = [1, 32], strides = [1, 1]} : vector<2x32xf32> to vector<1x32xf32>
    %12 = vector.broadcast %10 : vector<16x1xf32> to vector<16x32xf32>
    %13 = vector.broadcast %11 : vector<1x32xf32> to vector<16x32xf32>
    %14 = arith.mulf %12, %13 : vector<16x32xf32>
    %15 = arith.addf %9, %14 : vector<16x32xf32>
    %16 = tpu.iota {dimensions = array<i32: 0>} : vector<16x1xi32>
    %cst = arith.constant 0.000000e+00 : f32
    %17 = vector.broadcast %cst : f32 to vector<1x32xf32>
    %18 = vector.broadcast %2 : vector<1x32xf32> to vector<16x32xf32>
    %19 = arith.addf %15, %18 : vector<16x32xf32>
    %cst_6 = arith.constant 0.000000e+00 : f32
    %20 = vector.broadcast %cst_6 : f32 to vector<16x32xf32>
    %21 = arith.maximumf %19, %20 : vector<16x32xf32>
    %c1_i32 = arith.constant 1 : i32
    %c0_i32 = arith.constant 0 : i32
    %22 = arith.cmpi eq, %c1_i32, %c0_i32 : i32
    %c1_i32_7 = arith.constant 1 : i32
    %23 = arith.select %22, %c1_i32_7, %c1_i32 : i32
    %24 = vector.broadcast %23 : i32 to vector<16x1xi32>
    %25 = arith.remsi %16, %24 : vector<16x1xi32>
    %c0_i32_8 = arith.constant 0 : i32
    %26 = vector.broadcast %c0_i32_8 : i32 to vector<16x1xi32>
    %27 = arith.cmpi ne, %25, %26 : vector<16x1xi32>
    %c0_i32_9 = arith.constant 0 : i32
    %28 = vector.broadcast %c0_i32_9 : i32 to vector<16x1xi32>
    %29 = arith.cmpi slt, %25, %28 : vector<16x1xi32>
    %c0_i32_10 = arith.constant 0 : i32
    %30 = arith.cmpi slt, %23, %c0_i32_10 : i32
    %31 = vector.broadcast %30 : i1 to vector<16x1xi1>
    %32 = vector.broadcast %31 : vector<16x1xi1> to vector<16x1xi1>
    %33 = arith.xori %29, %32 : vector<16x1xi1>
    %34 = arith.andi %33, %27 : vector<16x1xi1>
    %35 = vector.broadcast %23 : i32 to vector<16x1xi32>
    %36 = arith.addi %25, %35 : vector<16x1xi32>
    %37 = arith.select %34, %36, %25 : vector<16x1xi1>, vector<16x1xi32>
    %c0_i32_11 = arith.constant 0 : i32
    %38 = vector.broadcast %c0_i32_11 : i32 to vector<16x1xi32>
    %39 = arith.cmpi eq, %37, %38 : vector<16x1xi32>
    %cst_12 = arith.constant 0.020833334 : f32
    %cst_13 = arith.constant 0.000000e+00 : f32
    %40 = vector.broadcast %cst_12 : f32 to vector<16x1xf32>
    %41 = vector.broadcast %cst_13 : f32 to vector<16x1xf32>
    %42 = arith.select %39, %40, %41 : vector<16x1xi1>, vector<16x1xf32>
    %43 = vector.broadcast %42 : vector<16x1xf32> to vector<16x32xf32>
    %44 = arith.mulf %21, %43 : vector<16x32xf32>
    %cst_14 = arith.constant dense<0.000000e+00> : vector<32xf32>
    %45 = vector.multi_reduction <add>, %44, %cst_14 [0] : vector<16x32xf32> to vector<32xf32>
    %46 = vector.shape_cast %45 : vector<32xf32> to vector<1x32xf32>
    %47 = arith.addf %17, %46 : vector<1x32xf32>
    %c15_i32 = arith.constant 15 : i32
    %48 = tpu.dynamic_rotate %15 by %c15_i32 dim 0 : vector<16x32xf32>, i32 -> vector<16x32xf32>
    %49 = arith.addf %15, %48 : vector<16x32xf32>
    %50 = vector.broadcast %2 : vector<1x32xf32> to vector<16x32xf32>
    %51 = arith.addf %49, %50 : vector<16x32xf32>
    %cst_15 = arith.constant 0.000000e+00 : f32
    %52 = vector.broadcast %cst_15 : f32 to vector<16x32xf32>
    %53 = arith.maximumf %51, %52 : vector<16x32xf32>
    %c2_i32 = arith.constant 2 : i32
    %c0_i32_16 = arith.constant 0 : i32
    %54 = arith.cmpi eq, %c2_i32, %c0_i32_16 : i32
    %c1_i32_17 = arith.constant 1 : i32
    %55 = arith.select %54, %c1_i32_17, %c2_i32 : i32
    %56 = vector.broadcast %55 : i32 to vector<16x1xi32>
    %57 = arith.remsi %16, %56 : vector<16x1xi32>
    %c0_i32_18 = arith.constant 0 : i32
    %58 = vector.broadcast %c0_i32_18 : i32 to vector<16x1xi32>
    %59 = arith.cmpi ne, %57, %58 : vector<16x1xi32>
    %c0_i32_19 = arith.constant 0 : i32
    %60 = vector.broadcast %c0_i32_19 : i32 to vector<16x1xi32>
    %61 = arith.cmpi slt, %57, %60 : vector<16x1xi32>
    %c0_i32_20 = arith.constant 0 : i32
    %62 = arith.cmpi slt, %55, %c0_i32_20 : i32
    %63 = vector.broadcast %62 : i1 to vector<16x1xi1>
    %64 = vector.broadcast %63 : vector<16x1xi1> to vector<16x1xi1>
    %65 = arith.xori %61, %64 : vector<16x1xi1>
    %66 = arith.andi %65, %59 : vector<16x1xi1>
    %67 = vector.broadcast %55 : i32 to vector<16x1xi32>
    %68 = arith.addi %57, %67 : vector<16x1xi32>
    %69 = arith.select %66, %68, %57 : vector<16x1xi1>, vector<16x1xi32>
    %c0_i32_21 = arith.constant 0 : i32
    %70 = vector.broadcast %c0_i32_21 : i32 to vector<16x1xi32>
    %71 = arith.cmpi eq, %69, %70 : vector<16x1xi32>
    %cst_22 = arith.constant 0.0416666679 : f32
    %cst_23 = arith.constant 0.000000e+00 : f32
    %72 = vector.broadcast %cst_22 : f32 to vector<16x1xf32>
    %73 = vector.broadcast %cst_23 : f32 to vector<16x1xf32>
    %74 = arith.select %71, %72, %73 : vector<16x1xi1>, vector<16x1xf32>
    %75 = vector.broadcast %74 : vector<16x1xf32> to vector<16x32xf32>
    %76 = arith.mulf %53, %75 : vector<16x32xf32>
    %cst_24 = arith.constant dense<0.000000e+00> : vector<32xf32>
    %77 = vector.multi_reduction <add>, %76, %cst_24 [0] : vector<16x32xf32> to vector<32xf32>
    %78 = vector.shape_cast %77 : vector<32xf32> to vector<1x32xf32>
    %79 = arith.addf %47, %78 : vector<1x32xf32>
    %c15_i32_25 = arith.constant 15 : i32
    %80 = tpu.dynamic_rotate %15 by %c15_i32_25 dim 0 : vector<16x32xf32>, i32 -> vector<16x32xf32>
    %81 = arith.addf %15, %80 : vector<16x32xf32>
    %c14_i32 = arith.constant 14 : i32
    %82 = tpu.dynamic_rotate %15 by %c14_i32 dim 0 : vector<16x32xf32>, i32 -> vector<16x32xf32>
    %83 = arith.addf %81, %82 : vector<16x32xf32>
    %c13_i32 = arith.constant 13 : i32
    %84 = tpu.dynamic_rotate %15 by %c13_i32 dim 0 : vector<16x32xf32>, i32 -> vector<16x32xf32>
    %85 = arith.addf %83, %84 : vector<16x32xf32>
    %86 = vector.broadcast %2 : vector<1x32xf32> to vector<16x32xf32>
    %87 = arith.addf %85, %86 : vector<16x32xf32>
    %cst_26 = arith.constant 0.000000e+00 : f32
    %88 = vector.broadcast %cst_26 : f32 to vector<16x32xf32>
    %89 = arith.maximumf %87, %88 : vector<16x32xf32>
    %c4_i32 = arith.constant 4 : i32
    %c0_i32_27 = arith.constant 0 : i32
    %90 = arith.cmpi eq, %c4_i32, %c0_i32_27 : i32
    %c1_i32_28 = arith.constant 1 : i32
    %91 = arith.select %90, %c1_i32_28, %c4_i32 : i32
    %92 = vector.broadcast %91 : i32 to vector<16x1xi32>
    %93 = arith.remsi %16, %92 : vector<16x1xi32>
    %c0_i32_29 = arith.constant 0 : i32
    %94 = vector.broadcast %c0_i32_29 : i32 to vector<16x1xi32>
    %95 = arith.cmpi ne, %93, %94 : vector<16x1xi32>
    %c0_i32_30 = arith.constant 0 : i32
    %96 = vector.broadcast %c0_i32_30 : i32 to vector<16x1xi32>
    %97 = arith.cmpi slt, %93, %96 : vector<16x1xi32>
    %c0_i32_31 = arith.constant 0 : i32
    %98 = arith.cmpi slt, %91, %c0_i32_31 : i32
    %99 = vector.broadcast %98 : i1 to vector<16x1xi1>
    %100 = vector.broadcast %99 : vector<16x1xi1> to vector<16x1xi1>
    %101 = arith.xori %97, %100 : vector<16x1xi1>
    %102 = arith.andi %101, %95 : vector<16x1xi1>
    %103 = vector.broadcast %91 : i32 to vector<16x1xi32>
    %104 = arith.addi %93, %103 : vector<16x1xi32>
    %105 = arith.select %102, %104, %93 : vector<16x1xi1>, vector<16x1xi32>
    %c0_i32_32 = arith.constant 0 : i32
    %106 = vector.broadcast %c0_i32_32 : i32 to vector<16x1xi32>
    %107 = arith.cmpi eq, %105, %106 : vector<16x1xi32>
    %cst_33 = arith.constant 0.0833333358 : f32
    %cst_34 = arith.constant 0.000000e+00 : f32
    %108 = vector.broadcast %cst_33 : f32 to vector<16x1xf32>
    %109 = vector.broadcast %cst_34 : f32 to vector<16x1xf32>
    %110 = arith.select %107, %108, %109 : vector<16x1xi1>, vector<16x1xf32>
    %111 = vector.broadcast %110 : vector<16x1xf32> to vector<16x32xf32>
    %112 = arith.mulf %89, %111 : vector<16x32xf32>
    %cst_35 = arith.constant dense<0.000000e+00> : vector<32xf32>
    %113 = vector.multi_reduction <add>, %112, %cst_35 [0] : vector<16x32xf32> to vector<32xf32>
    %114 = vector.shape_cast %113 : vector<32xf32> to vector<1x32xf32>
    %115 = arith.addf %79, %114 : vector<1x32xf32>
    %cst_36 = arith.constant dense<0.000000e+00> : vector<1x16xf32>
    %116 = tpu.matmul %115, %3, %cst_36 {dimension_numbers = #tpu.dot_dimension_numbers<[1], [0], [0], [1], [0, 0, 1, 1], [], []>} : vector<1x32xf32>, vector<32x16xf32>, vector<1x16xf32> -> vector<1x16xf32>
    %117 = arith.addf %116, %4 : vector<1x16xf32>
    %c0_37 = arith.constant 0 : index
    %c0_38 = arith.constant 0 : index
    %118 = vector.load %arg2[%c0_37, %c0_38] : memref<1x16xf32, #tpu.memory_space<vmem>>, vector<1x16xf32>
    tpu.vector_store %arg2[%c0_37, %c0_38], %117 {strides = array<i32>} : memref<1x16xf32, #tpu.memory_space<vmem>>, vector<1x16xf32>,
    return
  }
}

</mosaic_0001>

<bundles_post_ra>
// kernel: tpu_custom_call.1
= control target key start
LH: loop header
LB: loop body
LE: loop exit
PB: predicated region body
PF: predicated region fallthrough
CT: control target
= control target key end

     0   :  { %v253_v1 = vmov 1   ;;  %v254_v2 = vmov 0   ;;  %s327_s0 = inlined_call_operand.vmem [shape: f32[16,2], index: 0, kind: input, shape index: {}]   ;;  %s328_s1 = inlined_call_operand.vmem [shape: f32[36,32], index: 1, kind: input, shape index: {}]   ;;  %s329_s2 = inlined_call_operand.hbm [shape: f32[1,16], index: 2, kind: output, shape index: {}]  }
   0x1   :  { %v12_v0 = vld [vmem:[%s327_s0] sm:$0xff]  ;;  %224 = vset.pattern.permute.xlu1 %v253_v1  ;;  %223 = vset.pattern.permute.xlu0 %v254_v2 }
   0x2   :  { %7 = vsyncpa [#allocation3], 0  ;;  %35 = vperm.xlu1 %224, %v12_v0   ;;  %23 = vperm.xlu0 %223, %v12_v0   ;;  %v13_v3 = vld [vmem:[%s327_s0 + $0x8] sm:$0xff]  ;;  %v19_v4 = vld [vmem:[%s328_s1 + $0x1b] sm:$0xff]  ;;  %v47_v11 = vlaneseq  ;;  %vm57_vm2 = vcmask 261120   ;;  %v255_v29 = vmov 0.0  }
   0x3   :  { %v18_v5 = vld [vmem:[%s328_s1 + $0x13] sm:$0xff]  ;;  %192 = vmatpush.msra.mxu0 %v19_v4  ;;  %v17_v6 = vld [vmem:[%s328_s1 + $0xb] sm:$0xff]  ;;  %v16_v7 = vld [vmem:[%s328_s1 + $0x3] sm:$0xff]  ;;  %s256_s26 = smov [#allocation2]   ;;  %s209_s30 = sshll.u32 %s329_s2, 4  ;;  %vm200_vm8 = vcmask 122880   ;;  %s210_s30 = int_to_ptr.hbm [resolvable:$true] %s209_s30 }
   0x4   :  { %v14_v8 = vld [vmem:[%s328_s1] sm:$0x3]  ;;  %v48_v16 = vshrl.u32 %v47_v11, 7  ;;  %v226_v17 = vld [vmem:[%s328_s1 + $0x2] ss:$0 sm:$0xff]  ;;  %s207_s27 = sshll.u32 %s256_s26, 4  ;;  %s208_s27 = int_to_ptr.vmem [resolvable:$true] %s207_s27 }
   0x5   :  { %193 = vmatpush.msra.mxu0 %v18_v5  ;;  %v42_v9 = vperm.slane %v14_v8, 1  ;;  %v31_v10 = vperm.slane %v14_v8, 0 }
   0x6   :  { %v49_v19 = vadd.s32 8, %v48_v16  ;;  %v83_v20 = vand.u32 1, %v48_v16  ;;  %vm70_vm1 = vcmp.lt.s32.totalorder %v48_v16, 7  ;;  %vm121_vm4 = vcmp.lt.s32.totalorder %v48_v16, 6 }
   0x7   :  { %194 = vmatpush.msra.mxu0 %v17_v6  ;;  %v141_v31 = vand.u32 3, %v48_v16  ;;  %vm128_vm5 = vcmp.lt.s32.totalorder %v48_v16, 5 }
   0x8   :  { %v90_v22 = vand.u32 1, %v49_v19  ;;  %vm103_vm0 = vcmp.eq.s32.totalorder %v83_v20, 0  ;;  %v148_v32 = vand.u32 3, %v49_v19 }
   0x9   :  { %195 = vmatpush.msra.mxu0 %v16_v7  ;;  %v105_v30 = vsel %vm103_vm0, 0.041666668, %v255_v29  ;;  %vm298_vm6 = vcmp.eq.s32.totalorder %v141_v31, 0 }
   0xa   :  { %39 = vperm.xlu1 %224, %v13_v3   ;;  %28 = vperm.xlu0 %223, %v13_v3   ;;  %vm104_vm3 = vcmp.eq.s32.totalorder %v90_v22, 0  ;;  %vm302_vm7 = vcmp.eq.s32.totalorder %v148_v32, 0  ;;  %v163_v6 = vsel %vm298_vm6, 0.083333336, %v255_v29 }
   0xb   :  { %v106_v39 = vsel %vm104_vm3, 0.041666668, %v255_v29  ;;  %v164_v7 = vsel %vm302_vm7, 0.083333336, %v255_v29 }
  0x12   :  { %225 = vset.pattern.permute.xlu0 %v253_v1 }
  0x74   :  { %v36_v12 = vpop.permute.xlu1 %35  ;;  %v24_v13 = vpop.permute.xlu0 %23 }
  0x75   :  { %v43_v14 = vmul.f32 %v42_v9, %v36_v12  ;;  %v32_v15 = vmul.f32 %v31_v10, %v24_v13 }
  0x77   :  { %v45_v18 = vadd.f32 %v43_v14, %v32_v15 }
  0x79   :  { %v51_v21 = vadd.f32 %v226_v17, %v45_v18  ;;  %v68_v33 = vrot.slane %v45_v18, 1  ;;  %v119_v38 = vrot.slane %v45_v18, 2  ;;  %v126_v48 = vrot.slane %v45_v18, 3 }
  0x7b   :  { %v53_v27 = vmax.f32 %v51_v21, 0.0 }
  0x7c   :  { %v40_v23 = vpop.permute.xlu1 %39  ;;  %v29_v24 = vpop.permute.xlu0 %28 }
  0x7d   :  { %v44_v25 = vmul.f32 %v42_v9, %v40_v23  ;;  %v33_v26 = vmul.f32 %v31_v10, %v29_v24  ;;  %v55_v37 = vmul.f32 0.020833334, %v53_v27 }
  0x7f   :  { %v46_v28 = vadd.f32 %v44_v25, %v33_v26  ;;  %v58_v58 = vsel %vm57_vm2, %v55_v37, 0.0  ;;  %v20_v37 = vld [vmem:[%s328_s1 + $0x23] sm:$0x1] }
  0x81   :  { %v52_v34 = vadd.f32 %v226_v17, %v46_v28  ;;  %v69_v35 = vrot.slane %v46_v28, 1  ;;  %v120_v36 = vrot.slane %v46_v28, 2  ;;  %v127_v43 = vrot.slane %v46_v28, 3 }
  0x83   :  { %v54_v40 = vmax.f32 %v52_v34, 0.0  ;;  %v71_v41 = vsel %vm70_vm1, %v68_v33, %v69_v35  ;;  %v72_v42 = vsel %vm70_vm1, %v69_v35, %v68_v33  ;;  %v122_v50 = vsel %vm121_vm4, %v119_v38, %v120_v36 }
  0x84   :  { %v73_v44 = vadd.f32 %v71_v41, %v45_v18  ;;  %v74_v45 = vadd.f32 %v72_v42, %v46_v28  ;;  %v123_v51 = vsel %vm121_vm4, %v120_v36, %v119_v38  ;;  %v129_v56 = vsel %vm128_vm5, %v126_v48, %v127_v43 }
  0x85   :  { %v56_v49 = vmul.f32 0.020833334, %v54_v40  ;;  %v130_v57 = vsel %vm128_vm5, %v127_v43, %v126_v48 }
  0x86   :  { %v76_v52 = vadd.f32 %v226_v17, %v74_v45  ;;  %v124_v53 = vadd.f32 %v122_v50, %v73_v44  ;;  %v125_v54 = vadd.f32 %v123_v51, %v74_v45  ;;  %v75_v55 = vadd.f32 %v226_v17, %v73_v44 }
  0x87   :  { %v59_v59 = vsel %vm57_vm2, %v56_v49, 0.0 }
  0x88   :  { %v78_v60 = vmax.f32 %v76_v52, 0.0  ;;  %v132_v61 = vadd.f32 %v130_v57, %v125_v54  ;;  %v60_v62 = vadd.f32 %v59_v59, %v58_v58  ;;  %v77_v63 = vmax.f32 %v75_v55, 0.0 }
  0x89   :  { %v131_v0 = vadd.f32 %v129_v56, %v124_v53 }
  0x8a   :  { %v61_v1 = vrot.slane %v60_v62, 4  ;;  %v107_v2 = vmul.f32 %v105_v30, %v77_v63  ;;  %v108_v3 = vmul.f32 %v106_v39, %v78_v60  ;;  %v134_v4 = vadd.f32 %v226_v17, %v132_v61 }
  0x8b   :  { %v133_v5 = vadd.f32 %v226_v17, %v131_v0 }
  0x8c   :  { %v62_v8 = vadd.f32 %v61_v1, %v60_v62  ;;  %v109_v9 = vsel %vm57_vm2, %v107_v2, 0.0  ;;  %v110_v10 = vsel %vm57_vm2, %v108_v3, 0.0  ;;  %v136_v11 = vmax.f32 %v134_v4, 0.0 }
  0x8d   :  { %v111_v12 = vadd.f32 %v110_v10, %v109_v9  ;;  %v135_v13 = vmax.f32 %v133_v5, 0.0 }
  0x8e   :  { %v166_v14 = vmul.f32 %v164_v7, %v136_v11  ;;  %v63_v18 = vrot.slane %v62_v8, 2 }
  0x8f   :  { %v112_v15 = vrot.slane %v111_v12, 4  ;;  %v165_v16 = vmul.f32 %v163_v6, %v135_v13 }
  0x90   :  { %v168_v17 = vsel %vm57_vm2, %v166_v14, 0.0  ;;  %v64_v23 = vadd.f32 %v63_v18, %v62_v8 }
  0x91   :  { %v113_v19 = vadd.f32 %v112_v15, %v111_v12  ;;  %v167_v20 = vsel %vm57_vm2, %v165_v16, 0.0 }
  0x92   :  { %v169_v21 = vadd.f32 %v168_v17, %v167_v20  ;;  %v65_v28 = vrot.slane %v64_v23, 1 }
  0x93   :  { %v114_v22 = vrot.slane %v113_v19, 2 }
  0x94   :  { %v170_v24 = vrot.slane %v169_v21, 4  ;;  %v66_v32 = vadd.f32 %v65_v28, %v64_v23 }
  0x95   :  { %v115_v25 = vadd.f32 %v114_v22, %v113_v19 }
  0x96   :  { %v171_v26 = vadd.f32 %v170_v24, %v169_v21 }
  0x97   :  { %v116_v27 = vrot.slane %v115_v25, 1 }
  0x98   :  { %v172_v29 = vrot.slane %v171_v26, 2 }
  0x99   :  { %v117_v30 = vadd.f32 %v116_v27, %v115_v25 }
  0x9a   :  { %v173_v31 = vadd.f32 %v172_v29, %v171_v26 }
  0x9b   :  { %v118_v34 = vadd.f32 %v117_v30, %v66_v32 }
  0x9c   :  { %v174_v33 = vrot.slane %v173_v31, 1 }
  0x9e   :  { %v175_v35 = vadd.f32 %v174_v33, %v173_v31 }
  0xa0   :  { %v176_v36 = vadd.f32 %v175_v35, %v118_v34 }
  0xa2   :  { %218 = vmatmul.msk.f32.vlgmr.msra.gmra.mxu0 %vm57_vm2, %v176_v36 }
 0x11f   :  { %v197_v38 = vpop.f32.mrf.mxu0 }
 0x120   :  { %v198_v39 = vadd.f32 %v197_v38, %v20_v37 }
 0x122   :  { %201 = vst.msk [vmem:[#allocation2] sm:$0x1] %vm200_vm8, %v198_v39 }
 0x123   :  { %212 = dma.vmem_to_hbm [thread:$0]  %s208_s27, 16, %s210_s30, [#allocation3]  }
 0x124   :  { %251 = dma.done.wait [#allocation3], 16  }
 0x125   :  { %252 = vsyncadd [#allocation3], 4294967280 }
 0x126   :  { %217 = vsyncpa [#allocation3], 1 }

</bundles_post_ra>
